<compile_context>
chip_gen: v7x
topology: tpu7x:2x2x1
jax: 0.10.0
libtpu: 0.0.40
codegen_flags: <defaults>
</compile_context>

<pallas_src>
import functools

import jax
import jax.numpy as jnp
from jax.experimental import pallas as pl
from jax.experimental.pallas import tpu as pltpu


# ---------------------------------------------------------------------------
# Kernels
# ---------------------------------------------------------------------------

def _fused_kernel(wrt_ref, brr_ref, wex_ref, bec_ref, x_ref, o_ref, *, inv_s):
    """One sample per grid step: reduce -> gate MLP -> scale, all in VMEM.

    wrt_ref: (C, rd) = w_reduce.T (f32)    brr_ref: (1, rd) = b_reduce (f32)
    wex_ref: (C, rd) = w_expand   (f32)    bec_ref: (C, 1)  = b_expand (f32)
    x_ref / o_ref: (C, S_pad) one sample slab in the input dtype.
    """
    x = x_ref[...]
    ssum = jnp.sum(x.astype(jnp.float32), axis=-1, keepdims=True)       # (C, 1)
    mean = ssum * inv_s                                                 # (C, 1)
    # se[r] = relu(sum_c w_reduce[r, c] * mean[c] + b_reduce[r])   -> (1, rd)
    # (channels stay on the sublane axis; no transposes in-kernel)
    se = jnp.sum(wrt_ref[...] * mean, axis=0, keepdims=True) + brr_ref[...]
    se = jnp.maximum(se, 0.0)
    # gate[c] = sigmoid(sum_r w_expand[c, r] * se[r] + b_expand[c]) -> (C, 1)
    logits = jnp.sum(wex_ref[...] * se, axis=-1, keepdims=True) + bec_ref[...]
    gate = 1.0 / (1.0 + jnp.exp(-logits))                               # f32
    # Multiply against the f32 gate; cast only the product.
    o_ref[...] = (x.astype(jnp.float32) * gate).astype(o_ref.dtype)


def _sum_kernel(x_ref, sum_ref, *, red_axis):
    """x_ref: (C, T1) tile; sum_ref: (C, 1) f32 output block that stays
    resident across the reduction grid axis `red_axis` (accumulator)."""
    @pl.when(pl.program_id(red_axis) == 0)
    def _():
        sum_ref[...] = jnp.zeros_like(sum_ref)

    sum_ref[...] += jnp.sum(x_ref[...].astype(jnp.float32), axis=-1,
                            keepdims=True)


def _scale_kernel(gate_ref, x_ref, o_ref):
    """gate_ref: (C, 1) f32; x_ref / o_ref: (C, T2).  Multiply against the f32
    gate, cast only the product (no gate quantization for bf16 inputs)."""
    o_ref[...] = (x_ref[...].astype(jnp.float32) * gate_ref[...]).astype(
        o_ref.dtype)


# ---------------------------------------------------------------------------
# Sizing helpers
# ---------------------------------------------------------------------------

def _round_up(x, m):
    return ((x + m - 1) // m) * m


def _vmem_limit_cap():
    """Generation-aware scoped-VMEM cap: leave ~24 MiB of physical headroom
    (=> ~40 MiB on v7x's 64 MiB VMEM, up to ~100 MiB on v5e/v6e's 128 MiB)."""
    cap = 64 << 20            # conservative fallback if the query fails
    try:
        info = pltpu.get_tpu_info()
        cap = int(getattr(info, "vmem_capacity_bytes", cap) or cap)
    except Exception:
        pass
    return max(24 << 20, min(cap - (24 << 20), 100 << 20))


# ---------------------------------------------------------------------------
# Forward
# ---------------------------------------------------------------------------

def squeeze_excite_3d(x, w_reduce, b_reduce, w_expand, b_expand,
                      s_tile=None, force_two_pass=False, donate_x=False):
    """SqueezeExcite3d forward.

    x: (N, C, D, H, W); w_reduce: (rd, C); b_reduce: (rd,);
    w_expand: (C, rd); b_expand: (C,).
    s_tile: optional override of the pass-2 spatial tile (multiple of 128);
            forces the two-pass path.
    donate_x: alias x into the output of the final pass (halves peak HBM
              residency when the caller can donate x).
    """
    N, C, D, H, W = x.shape
    S = D * H * W
    rd = w_reduce.shape[0]
    itemsize = int(jnp.dtype(x.dtype).itemsize)
    limit_cap = _vmem_limit_cap()
    x_flat = x.reshape(N, C, S)

    # Gate-MLP parameters, laid out so neither the in-kernel MLP nor the XLA
    # fallback needs transposes at runtime (channels stay on sublanes).
    wrt = w_reduce.astype(jnp.float32).T            # (C, rd)
    brr = b_reduce.astype(jnp.float32).reshape(1, rd)
    wex = w_expand.astype(jnp.float32)              # (C, rd)
    bec = b_expand.astype(jnp.float32).reshape(C, 1)

    # ---------------- fused single-pass path --------------------------------
    s_pad_min = _round_up(S, 128)
    slab_bytes = C * s_pad_min * itemsize
    # in + out double-buffered (4 streams) plus an f32-sized margin for the
    # cast/multiply temporaries inside the kernel.
    fused_need = 4 * slab_bytes + 4 * C * s_pad_min + (1 << 20)
    use_fused = ((not force_two_pass) and (s_tile is None)
                 and fused_need + (2 << 20) <= limit_cap)

    if use_fused:
        pad = s_pad_min - S
        xw = jnp.pad(x_flat, ((0, 0), (0, 0), (0, pad))) if pad else x_flat
        out_flat = pl.pallas_call(
            functools.partial(_fused_kernel, inv_s=1.0 / S),
            out_shape=jax.ShapeDtypeStruct((N, C, s_pad_min), x.dtype),
            grid=(N,),
            in_specs=[
                pl.BlockSpec((C, rd), lambda n: (0, 0)),               # w_red.T
                pl.BlockSpec((1, rd), lambda n: (0, 0)),               # b_red
                pl.BlockSpec((C, rd), lambda n: (0, 0)),               # w_exp
                pl.BlockSpec((C, 1), lambda n: (0, 0)),                # b_exp
                pl.BlockSpec((None, C, s_pad_min), lambda n: (n, 0, 0)),
            ],
            out_specs=pl.BlockSpec((None, C, s_pad_min), lambda n: (n, 0, 0)),
            input_output_aliases=({4: 0} if donate_x else {}),
            compiler_params=pltpu.CompilerParams(
                dimension_semantics=("parallel",),
                vmem_limit_bytes=int(min(max(fused_need, 16 << 20), limit_cap)),
            ),
            cost_estimate=pl.CostEstimate(
                flops=int(3 * N * C * S), transcendentals=int(N * C),
                bytes_accessed=int(2 * N * C * S * itemsize)),
        )(wrt, brr, wex, bec, xw)
        out_flat = out_flat[:, :, :S] if pad else out_flat
        return out_flat.reshape(N, C, D, H, W)

    # ---------------- two-pass fallback --------------------------------------
    budget = max(limit_cap - (2 << 20), 4 << 20)

    # pass-2 tile: in + out, double-buffered -> 4 streams of C*T2*itemsize.
    if s_tile is None:
        t2 = max(128, (budget // (4 * C * itemsize)) // 128 * 128)
        t2 = min(t2, s_pad_min)
    else:
        assert s_tile % 128 == 0, "s_tile must be a multiple of 128"
        t2 = int(s_tile)
    s_pad = _round_up(S, t2)
    n_s2 = s_pad // t2

    # v7x: if N is odd, split the pass-1 reduction into 2 partial sums on a
    # leading parallel grid axis so both TensorCores get work (harmless on
    # the single-core v5e/v6e).
    n_split = 2 if (N % 2 == 1 and n_s2 % 2 == 0) else 1

    # pass-1 tile: only the input stream is double-buffered (the (C,1) f32
    # accumulator is tiny), so the tile can be bigger than pass-2's.
    m = 1
    for cand in (8, 4, 2, 1):
        if n_s2 % (cand * n_split) == 0 and 2 * C * t2 * cand * itemsize <= budget:
            m = cand
            break
    t1 = t2 * m
    n_s1 = n_s2 // (m * n_split)

    pad = s_pad - S
    xw = jnp.pad(x_flat, ((0, 0), (0, 0), (0, pad))) if pad else x_flat

    vmem1 = int(min(max(2 * C * t1 * itemsize + (2 << 20), 16 << 20), limit_cap))
    vmem2 = int(min(max(4 * C * t2 * itemsize + (2 << 20), 16 << 20), limit_cap))
    sum_cost = pl.CostEstimate(flops=int(N * C * s_pad), transcendentals=0,
                               bytes_accessed=int(N * C * s_pad * itemsize
                                                  + N * n_split * C * 4))

    # ---- pass 1: per-(sample, channel) spatial sum --------------------------
    if n_split == 1:
        sums = pl.pallas_call(
            functools.partial(_sum_kernel, red_axis=1),
            out_shape=jax.ShapeDtypeStruct((N, C, 1), jnp.float32),
            grid=(N, n_s1),
            in_specs=[pl.BlockSpec((None, C, t1), lambda n, s: (n, 0, s))],
            out_specs=pl.BlockSpec((None, C, 1), lambda n, s: (n, 0, 0)),
            compiler_params=pltpu.CompilerParams(
                dimension_semantics=("parallel", "arbitrary"),
                vmem_limit_bytes=vmem1),
            cost_estimate=sum_cost,
        )(xw)
        total = sums[:, :, 0]                                           # (N, C)
    else:
        nsb = n_s1
        sums = pl.pallas_call(
            functools.partial(_sum_kernel, red_axis=2),
            out_shape=jax.ShapeDtypeStruct((N, n_split, C, 1), jnp.float32),
            grid=(n_split, N, nsb),
            in_specs=[pl.BlockSpec((None, C, t1),
                                   lambda p, n, s: (n, 0, p * nsb + s))],
            out_specs=pl.BlockSpec((None, None, C, 1),
                                   lambda p, n, s: (n, p, 0, 0)),
            compiler_params=pltpu.CompilerParams(
                dimension_semantics=("parallel", "parallel", "arbitrary"),
                vmem_limit_bytes=vmem1),
            cost_estimate=sum_cost,
        )(xw)
        total = jnp.sum(sums[..., 0], axis=1)                           # (N, C)

    # ---- gate MLP in plain XLA (only N*C (+rd) elements; off the hot path) --
    mean = total * (1.0 / S)                                            # (N, C)
    se = jnp.maximum(mean @ wrt + brr, 0.0)                             # (N, rd)
    gate = jax.nn.sigmoid(se @ wex.T + bec.T)                           # (N, C) f32
    gate = gate[:, :, None]                                             # (N, C, 1)

    # ---- pass 2: fully parallel excite (scale) pass --------------------------
    # Big n_s axis leads the grid so a megacore split lands on it even if N=1.
    out_flat = pl.pallas_call(
        _scale_kernel,
        out_shape=jax.ShapeDtypeStruct((N, C, s_pad), x.dtype),
        grid=(n_s2, N),
        in_specs=[
            pl.BlockSpec((None, C, 1), lambda s, n: (n, 0, 0)),          # gate
            pl.BlockSpec((None, C, t2), lambda s, n: (n, 0, s)),         # x
        ],
        out_specs=pl.BlockSpec((None, C, t2), lambda s, n: (n, 0, s)),
        input_output_aliases=({1: 0} if donate_x else {}),
        compiler_params=pltpu.CompilerParams(
            dimension_semantics=("parallel", "parallel"),
            vmem_limit_bytes=vmem2),
        cost_estimate=pl.CostEstimate(
            flops=int(N * C * s_pad), transcendentals=0,
            bytes_accessed=int(2 * N * C * s_pad * itemsize + N * C * 4)),
    )(gate, xw)
    out_flat = out_flat[:, :, :S] if pad else out_flat
    return out_flat.reshape(N, C, D, H, W)


# ---------------------------------------------------------------------------
# Pure-JAX reference matching the PyTorch forward
# ---------------------------------------------------------------------------

def _reference(x, w_reduce, b_reduce, w_expand, b_expand):
    x_se = jnp.mean(x, axis=(2, 3, 4), keepdims=True)                   # (N,C,1,1,1)
    x_se = (jnp.einsum('ncdhw,rc->nrdhw', x_se, w_reduce)
            + b_reduce[None, :, None, None, None])
    x_se = jnp.maximum(x_se, 0.0)
    x_se = (jnp.einsum('nrdhw,cr->ncdhw', x_se, w_expand)
            + b_expand[None, :, None, None, None])
    return x * jax.nn.sigmoid(x_se)


if __name__ == "__main__":
    in_chs = 8
    rd_channels = round(in_chs * 0.25)        # 2

    def make_inputs(key, N, C, D, H, W):
        k_x, k_w1, k_b1, k_w2, k_b2 = jax.random.split(key, 5)
        xx = jax.random.normal(k_x, (N, C, D, H, W), dtype=jnp.float32)
        w_r = jax.random.normal(k_w1, (rd_channels, C), jnp.float32) * 0.1
        b_r = jax.random.normal(k_b1, (rd_channels,), jnp.float32) * 0.1
        w_e = jax.random.normal(k_w2, (C, rd_channels), jnp.float32) * 0.1
        b_e = jax.random.normal(k_b2, (C,), jnp.float32) * 0.1
        return xx, w_r, b_r, w_e, b_e

    def check(out, ref, name):
        assert out.shape == ref.shape, name
        assert jnp.allclose(out, ref, atol=1e-5, rtol=1e-5), f"mismatch: {name}"

    # A) fused single-pass path: N=2, C=8, D=4, H=8, W=16 (S = 512).
    x, w_r, b_r, w_e, b_e = make_inputs(jax.random.PRNGKey(0), 2, in_chs, 4, 8, 16)
    ref = _reference(x, w_r, b_r, w_e, b_e)
    out = jax.block_until_ready(squeeze_excite_3d(x, w_r, b_r, w_e, b_e))
    check(out, ref, "fused path")

    # B) forced two-pass tiled path on the same input (tiled reduction +
    #    multi-tile parallel scale pass).
    out = jax.block_until_ready(
        squeeze_excite_3d(x, w_r, b_r, w_e, b_e, s_tile=128,
                          force_two_pass=True))
    check(out, ref, "two-pass path")

    # C) ragged spatial extent (S = 600 -> padded to 640), N=1: exercises
    #    zero-padding, the multi-step resident accumulator, and donate_x.
    x1, w_r1, b_r1, w_e1, b_e1 = make_inputs(jax.random.PRNGKey(1), 1, in_chs, 3, 5, 40)
    ref1 = _reference(x1, w_r1, b_r1, w_e1, b_e1)
    out1 = jax.block_until_ready(
        squeeze_excite_3d(x1, w_r1, b_r1, w_e1, b_e1, s_tile=128,
                          force_two_pass=True, donate_x=True))
    check(out1, ref1, "ragged two-pass path")

    # D) N odd with an even tile count: exercises the split-reduction grid
    #    (keeps both v7x TensorCores busy in pass 1).
    x2, w_r2, b_r2, w_e2, b_e2 = make_inputs(jax.random.PRNGKey(2), 1, in_chs, 4, 8, 16)
    ref2 = _reference(x2, w_r2, b_r2, w_e2, b_e2)
    out2 = jax.block_until_ready(
        squeeze_excite_3d(x2, w_r2, b_r2, w_e2, b_e2, s_tile=128,
                          force_two_pass=True))
    check(out2, ref2, "split-reduction path")

    print("KERNEL_OK")
</pallas_src>

<mosaic_0001>
module attributes {stable_mosaic.version = 11 : i64} {
  func.func @_fused_kernel(%arg0: i32, %arg1: memref<8x2xf32, #tpu.memory_space<vmem>>, %arg2: memref<1x2xf32, #tpu.memory_space<vmem>>, %arg3: memref<8x2xf32, #tpu.memory_space<vmem>>, %arg4: memref<8x1xf32, #tpu.memory_space<vmem>>, %arg5: memref<1x8x512xf32, #tpu.memory_space<vmem>>, %arg6: memref<1x8x512xf32, #tpu.memory_space<vmem>>) attributes {dimension_semantics = [#tpu.dimension_semantics<parallel>], iteration_bounds = array<i64: 2>, scalar_prefetch = 0 : i64, scratch_operands = 0 : i64, tpu.core_type = #tpu.core_type<tc>, window_params = [{pipeline_mode = #tpu.pipeline_mode<synchronous>, transform_indices = @transform_0, window_bounds = array<i64: 8, 2>}, {pipeline_mode = #tpu.pipeline_mode<synchronous>, transform_indices = @transform_1, window_bounds = array<i64: 1, 2>}, {pipeline_mode = #tpu.pipeline_mode<synchronous>, transform_indices = @transform_2, window_bounds = array<i64: 8, 2>}, {pipeline_mode = #tpu.pipeline_mode<synchronous>, transform_indices = @transform_3, window_bounds = array<i64: 8, 1>}, {transform_indices = @transform_4, window_bounds = array<i64: 1, 8, 512>}, {transform_indices = @transform_5, window_bounds = array<i64: 1, 8, 512>}]} {
    %c0 = arith.constant 0 : index
    %c0_0 = arith.constant 0 : index
    %c0_1 = arith.constant 0 : index
    %0 = vector.load %arg5[%c0, %c0_0, %c0_1] : memref<1x8x512xf32, #tpu.memory_space<vmem>>, vector<1x8x512xf32>
    %1 = vector.shape_cast %0 : vector<1x8x512xf32> to vector<8x512xf32>
    %cst = arith.constant dense<0.000000e+00> : vector<8xf32>
    %2 = vector.multi_reduction <add>, %1, %cst [1] : vector<8x512xf32> to vector<8xf32>
    %3 = vector.shape_cast %2 : vector<8xf32> to vector<8x1xf32>
    %cst_2 = arith.constant 0.001953125 : f32
    %4 = vector.broadcast %cst_2 : f32 to vector<8x1xf32>
    %5 = arith.mulf %3, %4 : vector<8x1xf32>
    %c0_3 = arith.constant 0 : index
    %c0_4 = arith.constant 0 : index
    %6 = vector.load %arg1[%c0_3, %c0_4] : memref<8x2xf32, #tpu.memory_space<vmem>>, vector<8x2xf32>
    %7 = vector.broadcast %5 : vector<8x1xf32> to vector<8x2xf32>
    %8 = arith.mulf %6, %7 : vector<8x2xf32>
    %cst_5 = arith.constant dense<0.000000e+00> : vector<2xf32>
    %9 = vector.multi_reduction <add>, %8, %cst_5 [0] : vector<8x2xf32> to vector<2xf32>
    %10 = vector.shape_cast %9 : vector<2xf32> to vector<1x2xf32>
    %c0_6 = arith.constant 0 : index
    %c0_7 = arith.constant 0 : index
    %11 = vector.load %arg2[%c0_6, %c0_7] : memref<1x2xf32, #tpu.memory_space<vmem>>, vector<1x2xf32>
    %12 = arith.addf %10, %11 : vector<1x2xf32>
    %cst_8 = arith.constant 0.000000e+00 : f32
    %13 = vector.broadcast %cst_8 : f32 to vector<1x2xf32>
    %14 = arith.maximumf %12, %13 : vector<1x2xf32>
    %c0_9 = arith.constant 0 : index
    %c0_10 = arith.constant 0 : index
    %15 = vector.load %arg3[%c0_9, %c0_10] : memref<8x2xf32, #tpu.memory_space<vmem>>, vector<8x2xf32>
    %16 = vector.broadcast %14 : vector<1x2xf32> to vector<8x2xf32>
    %17 = arith.mulf %15, %16 : vector<8x2xf32>
    %cst_11 = arith.constant dense<0.000000e+00> : vector<8xf32>
    %18 = vector.multi_reduction <add>, %17, %cst_11 [1] : vector<8x2xf32> to vector<8xf32>
    %19 = vector.shape_cast %18 : vector<8xf32> to vector<8x1xf32>
    %c0_12 = arith.constant 0 : index
    %c0_13 = arith.constant 0 : index
    %20 = vector.load %arg4[%c0_12, %c0_13] : memref<8x1xf32, #tpu.memory_space<vmem>>, vector<8x1xf32>
    %21 = arith.addf %19, %20 : vector<8x1xf32>
    %cst_14 = arith.constant 0.000000e+00 : f32
    %22 = vector.broadcast %cst_14 : f32 to vector<8x1xf32>
    %23 = arith.subf %22, %21 : vector<8x1xf32>
    %24 = math.exp %23 : vector<8x1xf32>
    %cst_15 = arith.constant 1.000000e+00 : f32
    %25 = vector.broadcast %cst_15 : f32 to vector<8x1xf32>
    %26 = arith.addf %25, %24 : vector<8x1xf32>
    %cst_16 = arith.constant 1.000000e+00 : f32
    %27 = vector.broadcast %cst_16 : f32 to vector<8x1xf32>
    %28 = arith.divf %27, %26 : vector<8x1xf32>
    %29 = vector.broadcast %28 : vector<8x1xf32> to vector<8x512xf32>
    %30 = arith.mulf %1, %29 : vector<8x512xf32>
    %c0_17 = arith.constant 0 : index
    %c0_18 = arith.constant 0 : index
    %c0_19 = arith.constant 0 : index
    %31 = vector.load %arg6[%c0_17, %c0_18, %c0_19] : memref<1x8x512xf32, #tpu.memory_space<vmem>>, vector<1x8x512xf32>
    %32 = vector.shape_cast %31 : vector<1x8x512xf32> to vector<8x512xf32>
    %33 = vector.shape_cast %30 : vector<8x512xf32> to vector<1x8x512xf32>
    tpu.vector_store %arg6[%c0_17, %c0_18, %c0_19], %33 {strides = array<i32>} : memref<1x8x512xf32, #tpu.memory_space<vmem>>, vector<1x8x512xf32>,
    return
  }
  func.func @transform_0(%arg0: i32) -> (i32, i32) {
    %c0_i32 = arith.constant 0 : i32
    %c0_i32_0 = arith.constant 0 : i32
    %c0_i32_1 = arith.constant 0 : i32
    return %c0_i32, %c0_i32_0 : i32, i32
  }
  func.func @transform_1(%arg0: i32) -> (i32, i32) {
    %c0_i32 = arith.constant 0 : i32
    %c0_i32_0 = arith.constant 0 : i32
    %c0_i32_1 = arith.constant 0 : i32
    return %c0_i32, %c0_i32_0 : i32, i32
  }
  func.func @transform_2(%arg0: i32) -> (i32, i32) {
    %c0_i32 = arith.constant 0 : i32
    %c0_i32_0 = arith.constant 0 : i32
    %c0_i32_1 = arith.constant 0 : i32
    return %c0_i32, %c0_i32_0 : i32, i32
  }
  func.func @transform_3(%arg0: i32) -> (i32, i32) {
    %c0_i32 = arith.constant 0 : i32
    %c0_i32_0 = arith.constant 0 : i32
    %c0_i32_1 = arith.constant 0 : i32
    return %c0_i32, %c0_i32_0 : i32, i32
  }
  func.func @transform_4(%arg0: i32) -> (i32, i32, i32) {
    %c0_i32 = arith.constant 0 : i32
    %c0_i32_0 = arith.constant 0 : i32
    %c0_i32_1 = arith.constant 0 : i32
    return %arg0, %c0_i32, %c0_i32_0 : i32, i32, i32
  }
  func.func @transform_5(%arg0: i32) -> (i32, i32, i32) {
    %c0_i32 = arith.constant 0 : i32
    %c0_i32_0 = arith.constant 0 : i32
    %c0_i32_1 = arith.constant 0 : i32
    return %arg0, %c0_i32, %c0_i32_0 : i32, i32, i32
  }
}

</mosaic_0001>

<bundles_post_ra>
// kernel: tpu_custom_call.1
= control target key start
LH: loop header
LB: loop body
LE: loop exit
PB: predicated region body
PF: predicated region fallthrough
CT: control target
= control target key end

     0   :  { %10 = vsyncpa [#allocation3], 0  ;;  %s758_s0 = inlined_call_operand.vmem [shape: f32[8,2], index: 0, kind: input, shape index: {}]   ;;  %s759_s1 = inlined_call_operand.vmem [shape: f32[1,2], index: 1, kind: input, shape index: {}]   ;;  %s760_s2 = inlined_call_operand.vmem [shape: f32[8,2], index: 2, kind: input, shape index: {}]   ;;  %s761_s3 = inlined_call_operand.vmem [shape: f32[8,1], index: 3, kind: input, shape index: {}]   ;;  %s762_s4 = inlined_call_operand.hbm [shape: f32[2,8,512], index: 4, kind: input, shape index: {}]   ;;  %s763_s5 = inlined_call_operand.hbm [shape: f32[2,8,512], index: 5, kind: output, shape index: {}]  }
   0x1   :  { %12 = vsyncpa [#allocation3 + $0x1], 0 }
   0x2   :  { %13 = vsyncpa [#allocation4], 0 }
   0x3   :  { %15 = vsyncpa [#allocation4 + $0x1], 0  ;;  %s579_s18 = smov 0   ;;  %s581_s19 = smov 0  }
   0x4   :  { %s583_s20 = smov 0   ;;  %s585_s21 = smov 0  }
   0x5 LB: > { %s600_s22 = sadd.s32 4294967295, %s544_s21   ;;  %s379_s23 = sadd.s32 4294967294, %s544_s21   ;;  %s544_s21 = sphi %s585_s21, %s778_s21   ;;  %s540_s20 = sphi %s583_s20, %s777_s20   ;;  %s536_s19 = sphi %s581_s19, %s776_s19   ;;  %s532_s18 = sphi %s579_s18, %s775_s18  }
   0x6   : > { %s604_s24 = sadd.s32 1, %s544_s21   ;;  %s112_s25 = sadd.s32 1, %s540_s20 }
   0x7   : > { %s109_s26 = ssub.s32 %s544_s21, %s604_s24  ;;  %p119_p0 = scmp.ne.s32.totalorder %s540_s20, %s536_s19 }
   0x8   : > { %p110_p1 = scmp.eq.s32.totalorder %s109_s26, 0  ;;  %p120_p2 = scmp.eq.s32.totalorder %s544_s21, 0 }
   0x9   : > { %p125_p3 = scmp.ne.s32.totalorder %s536_s19, %s532_s18  ;;  %p126_p4 = scmp.eq.s32.totalorder %s600_s22, 0 }
   0xa   : > { %s616_s27 = scalar_select %p110_p1, %s540_s20, %s112_s25  }
   0xb   : > { %p618_p5 = por %p120_p2, %p119_p0  ;;  %p622_p6 = por %p126_p4, %p125_p3 }
   0xc   : > { %p149_p7 = scmp.eq.s32.totalorder %s600_s22, 1  ;;  %p155_p8 = scmp.eq.s32.totalorder %s379_s23, 1 }
   0xd   : > { %p407_p10 = scmp.lt.s32.totalorder %s544_s21, 2  ;;  %s187_s7 = sand.u32 1, %s540_s20  }
   0xe   : > { %p629_p11 = por %p149_p7, %p119_p0  ;;  %p633_p12 = por %p155_p8, %p125_p3 }
   0xf   : > { %s393_s8 = sshll.u32 %s544_s21, 9  ;;  %s382_s9 = sshll.u32 %s187_s7, 5 }
  0x10   : > { %s767_s30 = scalar_select %p629_p11, 1, 0 }
  0x11   : > { %s768_s6 = scalar_select %p633_p12, 1, 0 }
  0x12   : > { %s642_s12 = scalar_lea.hbm %s762_s4, %s393_s8  ;;  %s191_s13 = scalar_lea.vmem [#allocation2], %s382_s9 }
  0x13   : > { %s199_s14 = sshll.u32 %s191_s13, 4  ;;  %p646_p13 = pnand %p407_p10, %p618_p5  ;;  %s650_s14 = int_to_ptr.vmem [resolvable:$true] %s199_s14 }
  0x14   : > { %s188_s16 = scalar_lea.sflag [#allocation3], %s187_s7  ;;  %s448_s17 = scalar_lea.hbm %s642_s12, 512 }
  0x15   : > { %p449_p2 = scmp.ne.s32.totalorder %s642_s12, %s448_s17  ;;  %p450_p3 = pneg %p646_p13 }
  0x16   : > { %s453_s26 = scalar_lea.hbm %s762_s4, 1024  ;;  %p454_p5 = scmp.lt.u32.totalorder %s642_s12, %s762_s4 }
  0x17   : > { %p451_p4 = pnand %p450_p3, %p449_p2  ;;  %p455_p8 = scmp.lt.u32.totalorder %s453_s26, %s448_s17 }
  0x18   : > { %p457_p9 = scmp.lt.u32.totalorder %s448_s17, %s642_s12 }
  0x19   : > { %p452_p7 = pneg %p451_p4  ;;  %p456_p10 = por %p455_p8, %p454_p5 }
  0x1b   : > { %p458_p0 = por %p457_p9, %p456_p10 }
  0x1d   : > { %p459_p1 = pnand %p458_p0, %p452_p7 }
  0x1f   : > { %462 = shalt.err (!%p459_p1)
}
  0x20   : > { %s463_s7 = scalar_lea.vmem %s650_s14, 512  ;;  %s546_s9 = smov [#allocation2]  }
  0x21   : > { %p464_p2 = scmp.ne.s32.totalorder %s650_s14, %s463_s7  ;;  %s468_s10 = sshll.u32 %s546_s9, 4  ;;  %s469_s10 = int_to_ptr.vmem [resolvable:$false] %s468_s10 }
  0x22   : > { %s470_s11 = scalar_lea.vmem %s469_s10, 1024  ;;  %p471_p11 = scmp.lt.s32.totalorder %s650_s14, %s469_s10 }
  0x23   : > { %p466_p4 = pnand %p464_p2, %p450_p3  ;;  %p472_p5 = scmp.lt.s32.totalorder %s470_s11, %s463_s7 }
  0x25   : > { %p467_p12 = pneg %p466_p4  ;;  %p473_p8 = por %p472_p5, %p471_p11 }
  0x27   : > { %p474_p9 = pnand %p473_p8, %p467_p12 }
  0x29   : > { %477 = shalt.err (!%p474_p9)
}
  0x2a   : > { %402 = dma.hbm_to_vmem [thread:$0]  (!%p646_p13), %s642_s12, 512, %s650_s14, %s188_s16  }
  0x2b   : > { %p770_p0 = scmp.lt.s32.totalorder %s544_s21, 3  ;;  %p771_p1 = scmp.ge.s32.totalorder %s544_s21, 1 }
  0x2d   : > { %p205_p3 = pnand %p771_p1, %p770_p0 }
  0x2e   : > { %s684_s13 = sand.u32 (!%p205_p3), 1, %s536_s19  }
  0x2f   : > { %208 = sbr.rel (%p205_p3) target bundleno = 547 (0x223), region = 40  ;;  %s386_s17 = sshll.u32 (!%p205_p3), %s684_s13, 5 }
  0x30   : > { %s211_s23 = scalar_lea.sflag (!%p205_p3), [#allocation3], %s684_s13  ;;  %s214_s15 = scalar_lea.vmem (!%p205_p3), [#allocation2], %s386_s17 }
  0x36   : > { %523 = dma.done.wait (%p622_p6), %s211_s23, 512  }
  0x37   : > { %525 = vsyncadd (%p622_p6), %s211_s23, 4294966784  ;;  %v241_v0 = vld [vmem:[%s214_s15] sm:$0xff]  ;;  %v242_v1 = vld [vmem:[%s214_s15 + $0x8] sm:$0xff]  ;;  %vm253_vm0 = vcmask 15360   ;;  %v265_v15 = vlaneseq  ;;  %v547_v28 = vmov 0   ;;  %s394_s7 = sshll.u32 %s600_s22, 9 }
  0x38   : > { %v243_v2 = vld [vmem:[%s214_s15 + $0x10] sm:$0xff]  ;;  %v245_v3 = vadd.f32 %v242_v1, %v241_v0  ;;  %v244_v4 = vld [vmem:[%s214_s15 + $0x18] sm:$0xff]  ;;  %442 = vset.pattern.permute.xlu1 %v547_v28  ;;  %443 = vset.pattern.permute.xlu0 %v547_v28  ;;  %s240_s9 = scalar_lea.vmem [#allocation5], %s386_s17  ;;  %s714_s15 = scalar_lea.hbm %s763_s5, %s394_s7 }
  0x39   : > { %v251_v7 = vld [vmem:[%s758_s0] sm:$0xff]  ;;  %v266_v18 = vshrl.u32 %v265_v15, 7  ;;  %s309_s10 = sshll.u32 %s240_s9, 4  ;;  %s295_s22 = scalar_lea.sflag [#allocation4], %s684_s13  ;;  %s716_s10 = int_to_ptr.vmem [resolvable:$true] %s309_s10 }
  0x3a   : > { %v246_v5 = vadd.f32 %v245_v3, %v243_v2  ;;  %v261_v19 = vld [vmem:[%s759_s1] sm:$0x1]  ;;  %s478_s17 = scalar_lea.vmem %s716_s10, 512  ;;  %p772_p11 = scmp.ne.s32.totalorder %s767_s30, 0 }
  0x3b   : > { %v267_v22 = vsub.s32 0, %v266_v18  ;;  %v264_v24 = vld [vmem:[%s760_s2] sm:$0xff]  ;;  %p479_p6 = scmp.ne.s32.totalorder %s716_s10, %s478_s17  ;;  %s548_s12 = smov [#allocation5]  }
  0x3c   : > { %v247_v6 = vadd.f32 %v246_v5, %v244_v4  ;;  %v273_v29 = vld [vmem:[%s761_s3] sm:$0xff]  ;;  %s482_s14 = sshll.u32 %s548_s12, 4  ;;  %s483_s14 = int_to_ptr.vmem [resolvable:$false] %s482_s14 }
  0x3d   : > { %p480_p12 = pnand %p479_p6, %p772_p11  ;;  %s484_s29 = scalar_lea.vmem %s483_s14, 1024 }
  0x3e   : > { %248 = vadd.xlane.f32.xlu0 %v247_v6  ;;  %p485_p7 = scmp.lt.s32.totalorder %s716_s10, %s483_s14  ;;  %p486_p10 = scmp.lt.s32.totalorder %s484_s29, %s478_s17 }
  0x3f   : > { %p481_p13 = pneg %p480_p12 }
  0x40   : > { %p487_p2 = por %p486_p10, %p485_p7 }
  0x42   : > { %p488_p4 = pnand %p487_p2, %p481_p13 }
  0xcb   : > { %v249_v8 = vpop.xlane.xlu0 %248 }
  0xcc   : > { %v250_v9 = vmul.f32 0.001953125, %v249_v8 }
  0xce   : > { %v252_v10 = vmul.f32 %v251_v7, %v250_v9 }
  0xd0   : > { %v254_v11 = vsel %vm253_vm0, %v252_v10, 0.0 }
  0xd1   : > { %v255_v12 = vrot.slane %v254_v11, 4 }
  0xd3   : > { %v256_v13 = vadd.f32 %v255_v12, %v254_v11 }
  0xd5   : > { %v257_v14 = vrot.slane %v256_v13, 2 }
  0xd7   : > { %v258_v16 = vadd.f32 %v257_v14, %v256_v13 }
  0xd9   : > { %v259_v17 = vrot.slane %v258_v16, 1 }
  0xdb   : > { %v260_v20 = vadd.f32 %v259_v17, %v258_v16 }
  0xdd   : > { %v262_v21 = vadd.f32 %v261_v19, %v260_v20 }
  0xdf   : > { %v263_v23 = vmax.f32 %v262_v21, 0.0 }
  0xe1   : > { %v268_v25 = vrot.slane %v263_v23, %v267_v22 }
  0xe3   : > { %v269_v26 = vmul.f32 %v268_v25, %v264_v24 }
  0xe5   : > { %v270_v27 = vsel %vm253_vm0, %v269_v26, 0.0 }
  0xe6   : > { %271 = vadd.xlane.f32.xlu0 %v270_v27 }
 0x173   : > { %v272_v30 = vpop.xlane.xlu0 %271 }
 0x174   : > { %v274_v31 = vadd.f32 %v273_v29, %v272_v30 }
 0x176   : > { %v275_v32 = vsub.f32 0.0, %v274_v31 }
 0x178   : > { %v276_v33 = vmul.f32 1.442695, %v275_v32 }
 0x17a   : > { %444 = vpow2.f32 %v276_v33 }
 0x184   : > { %v445_v34 = vpop.eup %444 }
 0x185   : > { %v278_v35 = vadd.f32 1.0, %v445_v34 }
 0x187   : > { %446 = vrcp.f32 %v278_v35 }
 0x191   : > { %v447_v36 = vpop.eup %446 }
 0x192   : > { %283 = vperm.xlu1 %442, %v447_v36  }
 0x211   : > { %v284_v37 = vpop.permute.xlu1 %283 }
 0x212   : > { %v286_v38 = vmul.f32 %v284_v37, %v241_v0  ;;  %v287_v39 = vmul.f32 %v284_v37, %v242_v1  ;;  %v288_v40 = vmul.f32 %v284_v37, %v243_v2  ;;  %v289_v41 = vmul.f32 %v284_v37, %v244_v4 }
 0x214   : > { %290 = vst [vmem:[%s240_s9] sm:$0xff] %v286_v38  ;;  %291 = vst [vmem:[%s240_s9 + $0x8] sm:$0xff] %v287_v39 }
 0x215   : > { %292 = vst [vmem:[%s240_s9 + $0x10] sm:$0xff] %v288_v40  ;;  %293 = vst [vmem:[%s240_s9 + $0x18] sm:$0xff] %v289_v41 }
 0x216   : > { %491 = shalt.err (!%p488_p4)
}
 0x217   : > { %s492_s13 = scalar_lea.hbm %s714_s15, 512  ;;  %s496_s26 = scalar_lea.hbm %s763_s5, 1024 }
 0x218   : > { %p493_p5 = scmp.ne.s32.totalorder %s714_s15, %s492_s13  ;;  %p497_p0 = scmp.lt.u32.totalorder %s714_s15, %s763_s5 }
 0x219   : > { %p498_p1 = scmp.lt.u32.totalorder %s496_s26, %s492_s13  ;;  %p500_p6 = scmp.lt.u32.totalorder %s492_s13, %s714_s15 }
 0x21a   : > { %p494_p8 = pnand %p493_p5, %p772_p11 }
 0x21b   : > { %p499_p3 = por %p498_p1, %p497_p0 }
 0x21c   : > { %p495_p9 = pneg %p494_p8 }
 0x21d   : > { %p501_p12 = por %p500_p6, %p499_p3 }
 0x21f   : > { %p502_p13 = pnand %p501_p12, %p495_p9 }
 0x221   : > { %505 = shalt.err (!%p502_p13)
}
 0x222   : > { %397 = dma.vmem_to_hbm [thread:$0]  (%p772_p11), %s716_s10, 512, %s714_s15, %s295_s22  }
 0x223 PF: > { %s321_s7 = sand.u32 1, %s532_s18   ;;  %p773_p7 = scmp.ne.s32.totalorder %s768_s6, 0 }
 0x224   : > { %p774_p10 = scmp.ge.s32.totalorder %s544_s21, 2  ;;  %s322_s9 = scalar_lea.sflag [#allocation4], %s321_s7 }
 0x226   : > { %p404_p2 = pnand %p774_p10, %p773_p7 }
 0x228   : > { %527 = dma.done.wait (!%p404_p2), %s322_s9, 512  }
 0x229   : > { %529 = vsyncadd (!%p404_p2), %s322_s9, 4294966784  ;;  %p18_p4 = scmp.ge.s32.totalorder %s604_s24, 4   ;;  %s775_s18 = smov %s536_s19 }
 0x22a   : > { %s776_s19 = smov %s540_s20  ;;  %s777_s20 = smov %s616_s27 }
 0x22b   : > { %s778_s21 = smov %s604_s24  ;;  %20 = sbr.rel (!%p18_p4) target bundleno = 5 (0x5), region = 85 }
 0x232   :  { %327 = vsyncpa [#allocation3], 1 }
 0x233   :  { %329 = vsyncpa [#allocation3 + $0x1], 1 }
 0x234   :  { %330 = vsyncpa [#allocation4], 1 }
 0x235   :  { %332 = vsyncpa [#allocation4 + $0x1], 1 }

</bundles_post_ra>
